<compile_context>
chip_gen: v6e
topology: v6e:2x2x1
jax: 0.10.0
libtpu: 0.0.40
codegen_flags: <defaults>
</compile_context>

<pallas_src>
import numpy as np
import jax
import jax.numpy as jnp
from jax.experimental import pallas as pl
from jax.experimental.pallas import tpu as pltpu

_VMEM_LIMIT = 32 * 1024 * 1024  # explicit, <= default scoped VMEM on v5e/v6e/v7x


def _pick_tile(dim, cap, base):
    """Largest tile <= cap that divides dim and is a multiple of base, else dim."""
    if dim <= cap:
        return dim
    t = (cap // base) * base
    while t >= base:
        if dim % t == 0:
            return t
        t -= base
    return dim


# --------------------------- tiled matmul + bias ----------------------------

def _matmul_bias(x, w, b, *, tm_cap=256, tn_cap=256, tk_cap=512):
    """out = x @ w + b.  x:(M,K) w:(K,N) b:(N,).  bf16 MXU inputs, f32 accum."""
    M, K = x.shape
    K2, N = w.shape
    assert K == K2
    tm = _pick_tile(M, tm_cap, 8)
    tn = _pick_tile(N, tn_cap, 128)
    tk = _pick_tile(K, tk_cap, 128)
    xb = x.astype(jnp.bfloat16)
    wb = w.astype(jnp.bfloat16)
    b2 = b.reshape(1, N).astype(jnp.float32)

    def kernel(x_ref, w_ref, b_ref, o_ref, acc_ref):
        @pl.when(pl.program_id(2) == 0)
        def _():
            acc_ref[...] = jnp.zeros_like(acc_ref)

        acc_ref[...] += jnp.dot(x_ref[...], w_ref[...],
                                preferred_element_type=jnp.float32)

        @pl.when(pl.program_id(2) == pl.num_programs(2) - 1)
        def _():
            o_ref[...] = (acc_ref[...] + b_ref[...]).astype(o_ref.dtype)

    return pl.pallas_call(
        kernel,
        out_shape=jax.ShapeDtypeStruct((M, N), jnp.float32),
        grid=(M // tm, N // tn, K // tk),
        in_specs=[pl.BlockSpec((tm, tk), lambda i, j, k: (i, k)),
                  pl.BlockSpec((tk, tn), lambda i, j, k: (k, j)),
                  pl.BlockSpec((1, tn), lambda i, j, k: (0, j))],
        out_specs=pl.BlockSpec((tm, tn), lambda i, j, k: (i, j)),
        scratch_shapes=[pltpu.VMEM((tm, tn), jnp.float32)],
        compiler_params=pltpu.CompilerParams(
            dimension_semantics=("parallel", "parallel", "arbitrary"),
            vmem_limit_bytes=_VMEM_LIMIT),
    )(xb, wb, b2)


# ------------------------- GroupNorm statistics ------------------------------

def _gn_channel_stats(x2):
    """Per-(batch, channel) sum and sum-of-squares, tiled over HW.  x2:(B,HW,C)."""
    B, HW, C = x2.shape
    thw = _pick_tile(HW, 2048, 8)

    def kernel(x_ref, s_ref, q_ref):
        @pl.when(pl.program_id(1) == 0)
        def _():
            s_ref[...] = jnp.zeros_like(s_ref)
            q_ref[...] = jnp.zeros_like(q_ref)

        xb = x_ref[0]                                          # (thw, C) f32
        s_ref[...] += jnp.sum(xb, axis=0, keepdims=True)[None, :, :]
        q_ref[...] += jnp.sum(xb * xb, axis=0, keepdims=True)[None, :, :]

    return pl.pallas_call(
        kernel,
        out_shape=(jax.ShapeDtypeStruct((B, 1, C), jnp.float32),
                   jax.ShapeDtypeStruct((B, 1, C), jnp.float32)),
        grid=(B, HW // thw),
        in_specs=[pl.BlockSpec((1, thw, C), lambda b, k: (b, k, 0))],
        out_specs=(pl.BlockSpec((1, 1, C), lambda b, k: (b, 0, 0)),
                   pl.BlockSpec((1, 1, C), lambda b, k: (b, 0, 0))),
        compiler_params=pltpu.CompilerParams(
            dimension_semantics=("parallel", "arbitrary"),
            vmem_limit_bytes=_VMEM_LIMIT),
    )(x2)


def _gn_affine(x_nhwc, gamma, beta, num_groups, eps=1e-6):
    """Per-batch, per-channel GN scale/shift: y = x*scale + shift  (tiny glue math)."""
    B, H, W, C = x_nhwc.shape
    G = int(num_groups)
    Cg = C // G
    s, q = _gn_channel_stats(x_nhwc.reshape(B, H * W, C))
    s = s.reshape(B, C)
    q = q.reshape(B, C)
    n = H * W * Cg
    gs = s.reshape(B, G, Cg).sum(-1)
    gq = q.reshape(B, G, Cg).sum(-1)
    mean = gs / n
    var = gq / n - mean * mean
    rstd = jax.lax.rsqrt(var + eps)
    mean_c = jnp.repeat(mean, Cg, axis=1)                      # (B, C)
    rstd_c = jnp.repeat(rstd, Cg, axis=1)
    scale = rstd_c * gamma[None, :]
    shift = beta[None, :] - mean_c * scale
    return scale.reshape(B, 1, C), shift.reshape(B, 1, C)


# ---------------- fused GroupNorm-apply + SiLU + 3x3 conv --------------------

def _gn_silu_conv3x3(x_nhwc, scale, shift, w, bias_per_batch, residual=None):
    """
    out = conv3x3(silu(x*scale + shift), w) + bias_per_batch (+ residual)

    x_nhwc:(B,H,W,Cin) f32   scale/shift:(B,1,Cin) f32   w:(3,3,Cin,Cout)
    bias_per_batch:(B,1,Cout) f32 (conv bias, optionally + temb projection)
    residual:(B,H,W,Cout) or None.   Returns (B,H,W,Cout) f32.
    """
    B, H, W, Cin = x_nhwc.shape
    Cout = w.shape[-1]
    Hp, Wp = H + 3, W + 2            # 1 halo row/col + 2 spare rows so tap slices stay in-bounds
    Npos = Hp * Wp
    Mout = H * Wp                    # flattened (row, padded-col) output positions
    tn = _pick_tile(Cout, 256, 128)
    nj = Cout // tn

    xpad = jnp.pad(x_nhwc, ((0, 0), (1, 2), (1, 1), (0, 0)))
    xf = xpad.reshape(B, Npos, Cin).astype(jnp.float32)

    # Conv zero-padding must be applied AFTER norm + SiLU -> interior mask.
    r = np.arange(Hp)[:, None]
    c = np.arange(Wp)[None, :]
    interior = ((r >= 1) & (r <= H) & (c >= 1) & (c <= W)).astype(np.float32)
    mask = jnp.asarray(interior.reshape(1, Npos, 1))

    wf = w.reshape(9 * Cin, Cout).astype(jnp.bfloat16)
    bias = bias_per_batch.astype(jnp.float32)

    has_res = residual is not None
    if has_res:
        res = jnp.pad(residual, ((0, 0), (0, 0), (0, 2), (0, 0))).reshape(B, Mout, Cout)

    def kernel(*refs):
        if has_res:
            x_ref, m_ref, sc_ref, sh_ref, w_ref, b_ref, r_ref, o_ref, act_ref, acc_ref = refs
        else:
            x_ref, m_ref, sc_ref, sh_ref, w_ref, b_ref, o_ref, act_ref, acc_ref = refs
            r_ref = None
        j = pl.program_id(1)

        # GN-apply + SiLU (f32, VPU/EUP) + zero the conv padding; cached in VMEM
        # and reused across Cout tiles (input block is also not re-DMA'd).
        @pl.when(j == 0)
        def _():
            xb = x_ref[0]                                      # (Npos, Cin) f32
            y = xb * sc_ref[0] + sh_ref[0]
            y = y * (1.0 / (1.0 + jnp.exp(-y)))                # SiLU
            act_ref[...] = y * m_ref[0]

        # 3x3 conv = 9 shifted (Mout,Cin)x(Cin,tn) MXU matmuls, f32 VMEM accumulator.
        acc_ref[...] = jnp.zeros_like(acc_ref)
        for t in range(9):
            di, dj = t // 3, t % 3
            off = di * Wp + dj
            patch = act_ref[pl.ds(off, Mout), :].astype(jnp.bfloat16)
            wt = w_ref[pl.ds(t * Cin, Cin), :]
            acc_ref[...] += jnp.dot(patch, wt, preferred_element_type=jnp.float32)

        out_val = acc_ref[...] + b_ref[0]
        if has_res:
            out_val = out_val + r_ref[0]                       # fused residual add
        o_ref[0] = out_val.astype(o_ref.dtype)

    in_specs = [
        pl.BlockSpec((1, Npos, Cin), lambda b, j: (b, 0, 0)),  # x (padded, flattened)
        pl.BlockSpec((1, Npos, 1), lambda b, j: (0, 0, 0)),    # interior mask
        pl.BlockSpec((1, 1, Cin), lambda b, j: (b, 0, 0)),     # GN scale
        pl.BlockSpec((1, 1, Cin), lambda b, j: (b, 0, 0)),     # GN shift
        pl.BlockSpec((9 * Cin, tn), lambda b, j: (0, j)),      # weights (tap-major)
        pl.BlockSpec((1, 1, tn), lambda b, j: (b, 0, j)),      # per-batch bias
    ]
    args = [xf, mask, scale, shift, wf, bias]
    if has_res:
        in_specs.append(pl.BlockSpec((1, Mout, tn), lambda b, j: (b, 0, j)))
        args.append(res)

    out = pl.pallas_call(
        kernel,
        out_shape=jax.ShapeDtypeStruct((B, Mout, Cout), jnp.float32),
        grid=(B, nj),
        in_specs=in_specs,
        out_specs=pl.BlockSpec((1, Mout, tn), lambda b, j: (b, 0, j)),
        scratch_shapes=[pltpu.VMEM((Npos, Cin), jnp.float32),
                        pltpu.VMEM((Mout, tn), jnp.float32)],
        compiler_params=pltpu.CompilerParams(
            dimension_semantics=("parallel", "arbitrary"),
            vmem_limit_bytes=_VMEM_LIMIT),
    )(*args)
    return out.reshape(B, H, Wp, Cout)[:, :, :W, :]


# ------------------------------ ResnetBlock ---------------------------------

def _norm_num_groups(c, num_groups=32):
    """Replicates Normalize() group-count selection."""
    if num_groups > c:
        return 1
    if c % num_groups != 0:
        for i in range(min(num_groups, c), 0, -1):
            if c % i == 0:
                return i
        return 1
    return num_groups


def init_resnet_block(key, *, in_channels, out_channels=None, conv_shortcut=False,
                      dropout=0.0, temb_channels=512):
    # l4q wrappers are disabled (enabled=False) -> plain conv2d / linear.
    out_channels = in_channels if out_channels is None else out_channels
    ks = jax.random.split(key, 8)

    def conv_init(k, kh, kw, cin, cout):
        kw_, kb_ = jax.random.split(k)
        wv = jax.random.normal(kw_, (kh, kw, cin, cout), jnp.float32) / np.sqrt(kh * kw * cin)
        bv = 0.1 * jax.random.normal(kb_, (cout,), jnp.float32)
        return wv, bv

    def gn_init(k, c):
        kg, kb = jax.random.split(k)
        gamma = 1.0 + 0.1 * jax.random.normal(kg, (c,), jnp.float32)
        beta = 0.1 * jax.random.normal(kb, (c,), jnp.float32)
        return gamma, beta, _norm_num_groups(c)

    p = {
        'in_channels': in_channels,
        'out_channels': out_channels,
        'dropout': dropout,                      # identity at inference
        'norm1': gn_init(ks[0], in_channels),
        'conv1': conv_init(ks[1], 3, 3, in_channels, out_channels),
        'norm2': gn_init(ks[2], out_channels),
        'conv2': conv_init(ks[3], 3, 3, out_channels, out_channels),
    }
    if temb_channels > 0:
        kw_, kb_ = jax.random.split(ks[4])
        wt = jax.random.normal(kw_, (temb_channels, out_channels), jnp.float32) / np.sqrt(temb_channels)
        bt = 0.1 * jax.random.normal(kb_, (out_channels,), jnp.float32)
        p['temb_proj'] = (wt, bt)
    if in_channels != out_channels:
        if conv_shortcut:
            # TODO(synk): use_conv_shortcut=True (3x3 shortcut) not implemented.
            raise NotImplementedError("conv_shortcut=True not implemented")
        p['nin_shortcut'] = conv_init(ks[5], 1, 1, in_channels, out_channels)
    return p


def resnet_block_forward(p, x_nhwc, temb=None):
    """ResnetBlock.forward(x, temb) in NHWC (dropout = identity, inference)."""
    B, H, W, Cin = x_nhwc.shape
    Cout = p['out_channels']

    # shortcut branch (1x1 nin_shortcut when channel counts differ)
    if Cin != Cout:
        wn, bn = p['nin_shortcut']
        sc = _matmul_bias(x_nhwc.reshape(B * H * W, Cin),
                          wn.reshape(Cin, Cout), bn).reshape(B, H, W, Cout)
    else:
        sc = x_nhwc

    # h = conv1(silu(norm1(x))) + bias1 + temb_proj(silu(temb))   (all fused)
    g1, b1, G1 = p['norm1']
    scale1, shift1 = _gn_affine(x_nhwc, g1, b1, G1)
    w1, cb1 = p['conv1']
    bias1 = jnp.broadcast_to(cb1[None, :], (B, Cout))
    if temb is not None and 'temb_proj' in p:
        wt, bt = p['temb_proj']
        bias1 = bias1 + _matmul_bias(jax.nn.silu(temb), wt, bt)   # (B, Cout)
    h = _gn_silu_conv3x3(x_nhwc, scale1, shift1, w1, bias1.reshape(B, 1, Cout))

    # out = conv2(dropout(silu(norm2(h)))) + shortcut     (dropout = identity)
    g2, b2, G2 = p['norm2']
    scale2, shift2 = _gn_affine(h, g2, b2, G2)
    w2, cb2 = p['conv2']
    bias2 = jnp.broadcast_to(cb2[None, :], (B, 1, Cout))
    return _gn_silu_conv3x3(h, scale2, shift2, w2, bias2, residual=sc)


# ------------------------- pure-JAX f32 reference ----------------------------

def _ref_forward(p, x, temb):
    def gn(x, gamma, beta, G, eps=1e-6):
        B, H, W, C = x.shape
        xg = x.reshape(B, H, W, G, C // G)
        mean = xg.mean(axis=(1, 2, 4), keepdims=True)
        var = ((xg - mean) ** 2).mean(axis=(1, 2, 4), keepdims=True)
        xn = ((xg - mean) / jnp.sqrt(var + eps)).reshape(B, H, W, C)
        return xn * gamma[None, None, None, :] + beta[None, None, None, :]

    def conv(x, w, b, pad):
        y = jax.lax.conv_general_dilated(
            x, w, window_strides=(1, 1), padding=[(pad, pad), (pad, pad)],
            dimension_numbers=("NHWC", "HWIO", "NHWC"))
        return y + b[None, None, None, :]

    silu = jax.nn.silu
    g1, b1, G1 = p['norm1']
    h = conv(silu(gn(x, g1, b1, G1)), *p['conv1'], pad=1)
    if temb is not None and 'temb_proj' in p:
        wt, bt = p['temb_proj']
        h = h + (silu(temb) @ wt + bt)[:, None, None, :]
    g2, b2, G2 = p['norm2']
    h = conv(silu(gn(h, g2, b2, G2)), *p['conv2'], pad=1)
    if p['in_channels'] != p['out_channels']:
        x = conv(x, *p['nin_shortcut'], pad=0)
    return x + h


# ----------------------------------- driver ---------------------------------

if __name__ == "__main__":
    B, H, W = 2, 16, 16
    in_channels, out_channels, temb_channels = 64, 128, 512

    kp, kx, kt = jax.random.split(jax.random.PRNGKey(0), 3)
    params = init_resnet_block(kp, in_channels=in_channels, out_channels=out_channels,
                               conv_shortcut=False, dropout=0.0,
                               temb_channels=temb_channels)

    x_nchw = jax.random.normal(kx, (B, in_channels, H, W), jnp.float32)
    temb = jax.random.normal(kt, (B, temb_channels), jnp.float32)

    x_nhwc = jnp.transpose(x_nchw, (0, 2, 3, 1))           # NCHW -> NHWC
    y_nhwc = resnet_block_forward(params, x_nhwc, temb)
    y_nchw = jnp.transpose(y_nhwc, (0, 3, 1, 2))           # back to NCHW
    jax.block_until_ready(y_nchw)

    assert y_nchw.shape == (B, out_channels, H, W)
    assert bool(jnp.all(jnp.isfinite(y_nchw)))

    # Loose check vs pure-JAX f32 reference (kernels use bf16 MXU inputs).
    y_ref = jnp.transpose(_ref_forward(params, x_nhwc, temb), (0, 3, 1, 2))
    max_err = float(jnp.max(jnp.abs(y_nchw - y_ref)))
    assert max_err < 1e-1, f"max abs error too large: {max_err}"

    print("KERNEL_OK")
</pallas_src>

<mosaic_0001>
module attributes {stable_mosaic.version = 11 : i64} {
  func.func @kernel(%arg0: i32, %arg1: i32, %arg2: i32, %arg3: memref<256x64xbf16, #tpu.memory_space<vmem>>, %arg4: memref<64x128xbf16, #tpu.memory_space<vmem>>, %arg5: memref<1x128xf32, #tpu.memory_space<vmem>>, %arg6: memref<256x128xf32, #tpu.memory_space<vmem>>, %arg7: memref<256x128xf32, #tpu.memory_space<vmem>>) attributes {dimension_semantics = [#tpu.dimension_semantics<parallel>, #tpu.dimension_semantics<parallel>, #tpu.dimension_semantics<arbitrary>], iteration_bounds = array<i64: 2, 1, 1>, scalar_prefetch = 0 : i64, scratch_operands = 1 : i64, tpu.core_type = #tpu.core_type<tc>, window_params = [{transform_indices = @transform_0, window_bounds = array<i64: 256, 64>}, {transform_indices = @transform_1, window_bounds = array<i64: 64, 128>}, {transform_indices = @transform_2, window_bounds = array<i64: 1, 128>}, {transform_indices = @transform_3, window_bounds = array<i64: 256, 128>}]} {
    %c0_i32 = arith.constant 0 : i32
    %0 = arith.cmpi eq, %arg2, %c0_i32 : i32
    %1 = arith.extui %0 : i1 to i32
    %c0_i32_0 = arith.constant 0 : i32
    %2 = arith.cmpi ne, %1, %c0_i32_0 : i32
    scf.if %2 {
      %cst_10 = arith.constant 0.000000e+00 : f32
      %12 = vector.broadcast %cst_10 : f32 to vector<256x128xf32>
      %c0_11 = arith.constant 0 : index
      %c0_12 = arith.constant 0 : index
      %13 = vector.load %arg7[%c0_11, %c0_12] : memref<256x128xf32, #tpu.memory_space<vmem>>, vector<256x128xf32>
      tpu.vector_store %arg7[%c0_11, %c0_12], %12 {strides = array<i32>} : memref<256x128xf32, #tpu.memory_space<vmem>>, vector<256x128xf32>,
    } else {
    }
    %c0 = arith.constant 0 : index
    %c0_1 = arith.constant 0 : index
    %3 = vector.load %arg7[%c0, %c0_1] : memref<256x128xf32, #tpu.memory_space<vmem>>, vector<256x128xf32>
    %c0_2 = arith.constant 0 : index
    %c0_3 = arith.constant 0 : index
    %4 = vector.load %arg3[%c0_2, %c0_3] : memref<256x64xbf16, #tpu.memory_space<vmem>>, vector<256x64xbf16>
    %c0_4 = arith.constant 0 : index
    %c0_5 = arith.constant 0 : index
    %5 = vector.load %arg4[%c0_4, %c0_5] : memref<64x128xbf16, #tpu.memory_space<vmem>>, vector<64x128xbf16>
    %cst = arith.constant dense<0.000000e+00> : vector<256x128xf32>
    %6 = tpu.matmul %4, %5, %cst {dimension_numbers = #tpu.dot_dimension_numbers<[1], [0], [0], [1], [0, 0, 1, 1], [], []>} : vector<256x64xbf16>, vector<64x128xbf16>, vector<256x128xf32> -> vector<256x128xf32>
    %7 = arith.addf %3, %6 : vector<256x128xf32>
    %c0_6 = arith.constant 0 : index
    %c0_7 = arith.constant 0 : index
    %8 = vector.load %arg7[%c0_6, %c0_7] : memref<256x128xf32, #tpu.memory_space<vmem>>, vector<256x128xf32>
    tpu.vector_store %arg7[%c0_6, %c0_7], %7 {strides = array<i32>} : memref<256x128xf32, #tpu.memory_space<vmem>>, vector<256x128xf32>,
    %c0_i32_8 = arith.constant 0 : i32
    %9 = arith.cmpi eq, %arg2, %c0_i32_8 : i32
    %10 = arith.extui %9 : i1 to i32
    %c0_i32_9 = arith.constant 0 : i32
    %11 = arith.cmpi ne, %10, %c0_i32_9 : i32
    scf.if %11 {
      %c0_10 = arith.constant 0 : index
      %c0_11 = arith.constant 0 : index
      %12 = vector.load %arg7[%c0_10, %c0_11] : memref<256x128xf32, #tpu.memory_space<vmem>>, vector<256x128xf32>
      %c0_12 = arith.constant 0 : index
      %c0_13 = arith.constant 0 : index
      %13 = vector.load %arg5[%c0_12, %c0_13] : memref<1x128xf32, #tpu.memory_space<vmem>>, vector<1x128xf32>
      %14 = vector.broadcast %13 : vector<1x128xf32> to vector<256x128xf32>
      %15 = arith.addf %12, %14 : vector<256x128xf32>
      %c0_14 = arith.constant 0 : index
      %c0_15 = arith.constant 0 : index
      %16 = vector.load %arg6[%c0_14, %c0_15] : memref<256x128xf32, #tpu.memory_space<vmem>>, vector<256x128xf32>
      tpu.vector_store %arg6[%c0_14, %c0_15], %15 {strides = array<i32>} : memref<256x128xf32, #tpu.memory_space<vmem>>, vector<256x128xf32>,
    } else {
    }
    return
  }
  func.func @transform_0(%arg0: i32, %arg1: i32, %arg2: i32) -> (i32, i32) {
    %c0_i32 = arith.constant 0 : i32
    return %arg0, %arg2 : i32, i32
  }
  func.func @transform_1(%arg0: i32, %arg1: i32, %arg2: i32) -> (i32, i32) {
    %c0_i32 = arith.constant 0 : i32
    return %arg2, %arg1 : i32, i32
  }
  func.func @transform_2(%arg0: i32, %arg1: i32, %arg2: i32) -> (i32, i32) {
    %c0_i32 = arith.constant 0 : i32
    %c0_i32_0 = arith.constant 0 : i32
    return %c0_i32, %arg1 : i32, i32
  }
  func.func @transform_3(%arg0: i32, %arg1: i32, %arg2: i32) -> (i32, i32) {
    %c0_i32 = arith.constant 0 : i32
    return %arg0, %arg1 : i32, i32
  }
}

</mosaic_0001>

<bundles_post_ra>
// kernel: tpu_custom_call.1
= control target key start
LH: loop header
LB: loop body
LE: loop exit
PB: predicated region body
PF: predicated region fallthrough
CT: control target
= control target key end

     0   :  { %8 = vsyncpa [#allocation4], 0  ;;  %s1501_s0 = inlined_call_operand.vmem [shape: bf16[512,64], index: 0, kind: input, shape index: {}]   ;;  %s1502_s1 = inlined_call_operand.vmem [shape: bf16[64,128], index: 1, kind: input, shape index: {}]   ;;  %s1503_s2 = inlined_call_operand.vmem [shape: f32[1,128], index: 2, kind: input, shape index: {}]   ;;  %s1504_s3 = inlined_call_operand.hbm [shape: f32[512,128], index: 3, kind: output, shape index: {}]  }
   0x1   :  { %10 = vsyncpa [#allocation4 + $0x1], 0  ;;  %s1266_s12 = smov 0   ;;  %s1268_s13 = smov 0  }
   0x2   :  { %s1270_s14 = smov 0   ;;  %s1272_s15 = smov 0  }
   0x3   :  { %s1274_s16 = smov 0   ;;  %s1276_s17 = smov 0  }
   0x4 LB: > { %s967_s18 = sadd.s32 4294967295, %s1241_s17   ;;  %s968_s19 = sadd.s32 4294967294, %s1241_s17   ;;  %s1241_s17 = sphi %s1276_s17, %s16_s17   ;;  %s1237_s16 = sphi %s1274_s16, %s1511_s16   ;;  %s1233_s15 = sphi %s1272_s15, %s1510_s15   ;;  %s1229_s14 = sphi %s1270_s14, %s1509_s14   ;;  %s1225_s13 = sphi %s1268_s13, %s1508_s13   ;;  %s1221_s12 = sphi %s1266_s12, %s1507_s12  }
   0x5   : > { %s35_s20 = sadd.s32 1, %s1237_s16  ;;  %s126_s21 = sadd.s32 1, %s1229_s14 }
   0x6   : > { %p37_p0 = scmp.ge.s32.totalorder %s35_s20, 2  ;;  %p136_p1 = scmp.ne.s32.totalorder %s1229_s14, %s1225_s13 }
   0x7   : > { %p137_p2 = scmp.eq.s32.totalorder %s967_s18, 1  ;;  %p142_p3 = scmp.ne.s32.totalorder %s1225_s13, %s1221_s12 }
   0x8   : > { %s1513_s20 = smov (%p37_p0, %s35_s20), 0  ;;  %p143_p5 = scmp.eq.s32.totalorder %s968_s19, 1 }
   0x9   : > { %p1306_p4 = por %p137_p2, %p136_p1  ;;  %s121_s23 = ssub.s32 %s1237_s16, %s1513_s20 }
   0xa   : > { %p973_p6 = scmp.ge.s32.totalorder %s1241_s17, 1  ;;  %p124_p7 = scmp.eq.s32.totalorder %s121_s23, 0 }
   0xb   : > { %p1313_p8 = por %p143_p5, %p142_p3  ;;  %p191_p9 = scmp.lt.s32.totalorder %s1241_s17, 3 }
   0xc   : > { %s1319_s25 = scalar_select %p124_p7, %s1229_s14, %s126_s21  }
   0xd   : > { %p192_p10 = pnand %p973_p6, %p191_p9 }
   0xe   : > { %s975_s28 = sshll.u32 (!%p192_p10), %s1233_s15, 5  ;;  %s226_s18 = sand.u32 (!%p192_p10), 1, %s1225_s13  }
   0xf   : > { %195 = sbr.rel (%p192_p10) target bundleno = 276 (0x114), region = 32  ;;  %p230_p11 = scmp.lt.s32.totalorder (!%p192_p10), %s975_s28, 63 }
  0x10   : > { %s974_s19 = sshll.u32 (!%p192_p10), %s226_s18, 8  ;;  %s1019_s27 = sshll.u32 (!%p192_p10), %s1233_s15, 12 }
  0x11   : > { %s1381_s26 = scalar_lea.vmem (!%p192_p10), [#allocation3], %s974_s19  ;;  %s1444_s4 = scalar_lea.hbm (!%p192_p10), %s1504_s3, %s1019_s27 }
  0x12   : > { %s1456_s15 = scalar_lea.sflag (!%p192_p10), [#allocation4], %s226_s18 }
  0x14   : > { %v1145_v0 = vld [vmem:[%s1502_s1 + $0x18] sm:$0xff]   ;;  %v1146_v1 = vld [vmem:[%s1502_s1 + $0x10] sm:$0xff]   ;;  %s1515_s28 = smov (!%p230_p11, %s975_s28), 63  ;;  %v1147_v2 = vld [vmem:[%s1502_s1 + $0x8] sm:$0xff]   ;;  %vm464_vm0 = vcmask 523264  }
  0x15   : > { %1040 = vmatprep.subr.bf16.mxu0 %v1145_v0  ;;  %1080 = vmatprep.subr.bf16.mxu1 %v1145_v0  ;;  %s976_s6 = sshll.u32 %s1515_s28, 2  ;;  %v1148_v3 = vld [vmem:[%s1502_s1] sm:$0xff]   ;;  %s859_s28 = sshll.u32 %s1381_s26, 4  ;;  %s1446_s28 = int_to_ptr.vmem [resolvable:$true] %s859_s28 }
  0x16   : > { %1041 = vmatpush3.bf16.msra.mxu0 %v1145_v0  ;;  %1084 = vmatpush3.bf16.msra.mxu1 %v1145_v0  ;;  %s1337_s11 = scalar_lea.vmem %s1501_s0, %s976_s6  ;;  %v1377_v20 = vld [vmem:[%s1503_s2] ss:$0 sm:$0xff]  ;;  %s1165_s5 = scalar_lea.vmem %s1446_s28, 4096 }
  0x17   : > { %1042 = vmatprep.subr.bf16.mxu0 %v1146_v1  ;;  %1081 = vmatprep.subr.bf16.mxu1 %v1146_v1  ;;  %v1149_v4 = vld [vmem:[%s1337_s11] sm:$0xff]   ;;  %v1151_v6 = vld [vmem:[%s1337_s11 + $0x8] sm:$0xff]   ;;  %v1153_v8 = vld [vmem:[%s1337_s11 + $0x10] sm:$0xff]   ;;  %p1166_p12 = scmp.ne.s32.totalorder %s1446_s28, %s1165_s5  ;;  %s1243_s6 = smov [#allocation3]  }
  0x18   : > { %v1150_v5 = vld [vmem:[%s1337_s11 + $0x40] sm:$0xff]   ;;  %1048 = vmatprep.mubr.msk.bf16.mxu0 %vm464_vm0, %v1149_v4  ;;  %v1152_v7 = vld [vmem:[%s1337_s11 + $0x48] sm:$0xff]   ;;  %v1154_v9 = vld [vmem:[%s1337_s11 + $0x50] sm:$0xff]   ;;  %s1169_s7 = sshll.u32 %s1243_s6, 4  ;;  %s1170_s7 = int_to_ptr.vmem [resolvable:$false] %s1169_s7 }
  0x19   : > { %1064 = vmatprep.mubr.msk.bf16.mxu1 %vm464_vm0, %v1150_v5  ;;  %v1155_v10 = vld [vmem:[%s1337_s11 + $0x18] sm:$0xff]   ;;  %v1157_v12 = vld [vmem:[%s1337_s11 + $0x20] sm:$0xff]   ;;  %v1159_v14 = vld [vmem:[%s1337_s11 + $0x28] sm:$0xff]   ;;  %p1167_p13 = pnand %p1166_p12, %p1306_p4  ;;  %s1171_s8 = scalar_lea.vmem %s1170_s7, 8192 }
  0x1a   : > { %1043 = vmatpush3.bf16.msra.mxu0 %v1146_v1  ;;  %1085 = vmatpush3.bf16.msra.mxu1 %v1146_v1  ;;  %v1156_v11 = vld [vmem:[%s1337_s11 + $0x58] sm:$0xff]   ;;  %v1158_v13 = vld [vmem:[%s1337_s11 + $0x60] sm:$0xff]   ;;  %v1160_v15 = vld [vmem:[%s1337_s11 + $0x68] sm:$0xff]   ;;  %p1172_p1 = scmp.lt.s32.totalorder %s1446_s28, %s1170_s7  ;;  %p1173_p2 = scmp.lt.s32.totalorder %s1171_s8, %s1165_s5 }
  0x1b   : > { %1044 = vmatprep.subr.bf16.mxu0 %v1147_v2  ;;  %1082 = vmatprep.subr.bf16.mxu1 %v1147_v2  ;;  %v1161_v16 = vld [vmem:[%s1337_s11 + $0x30] sm:$0xff]   ;;  %v1163_v18 = vld [vmem:[%s1337_s11 + $0x38] sm:$0xff]   ;;  %p1168_p0 = pneg %p1167_p13 }
  0x1c   : > { %v1162_v17 = vld [vmem:[%s1337_s11 + $0x70] sm:$0xff]   ;;  %v1164_v19 = vld [vmem:[%s1337_s11 + $0x78] sm:$0xff]   ;;  %p1174_p3 = por %p1173_p2, %p1172_p1 }
  0x1e   : > { %1045 = vmatpush3.bf16.msra.mxu0 %v1147_v2  ;;  %1086 = vmatpush3.bf16.msra.mxu1 %v1147_v2  ;;  %p1175_p5 = pnand %p1174_p3, %p1168_p0 }
  0x1f   : > { %1046 = vmatprep.subr.bf16.mxu0 %v1148_v3  ;;  %1083 = vmatprep.subr.bf16.mxu1 %v1148_v3 }
  0x22   : > { %1047 = vmatpush3.bf16.msra.mxu0 %v1148_v3  ;;  %1087 = vmatpush3.bf16.msra.mxu1 %v1148_v3 }
  0x25   : > { %1049 = vmatmul.mubr.msk.bf16.vlgmr.msra.gmra.mxu0 %vm464_vm0, %v1151_v6  ;;  %1065 = vmatmul.mubr.msk.bf16.vlgmr.msra.gmra.mxu1 %vm464_vm0, %v1152_v7 }
  0x26   : > { %1052 = vmatprep.mubr.msk.bf16.mxu0 %vm464_vm0, %v1153_v8  ;;  %1068 = vmatprep.mubr.msk.bf16.mxu1 %vm464_vm0, %v1154_v9 }
  0x2d   : > { %1053 = vmatmul.mubr.msk.bf16.gmra.mxu0 %vm464_vm0, %v1155_v10  ;;  %1069 = vmatmul.mubr.msk.bf16.gmra.mxu1 %vm464_vm0, %v1156_v11 }
  0x2e   : > { %1056 = vmatprep.mubr.msk.bf16.mxu0 %vm464_vm0, %v1157_v12  ;;  %1072 = vmatprep.mubr.msk.bf16.mxu1 %vm464_vm0, %v1158_v13 }
  0x35   : > { %1057 = vmatmul.mubr.msk.bf16.gmra.mxu0 %vm464_vm0, %v1159_v14  ;;  %1073 = vmatmul.mubr.msk.bf16.gmra.mxu1 %vm464_vm0, %v1160_v15 }
  0x36   : > { %1060 = vmatprep.mubr.msk.bf16.mxu0 %vm464_vm0, %v1161_v16  ;;  %1076 = vmatprep.mubr.msk.bf16.mxu1 %vm464_vm0, %v1162_v17 }
  0x3d   : > { %1061 = vmatmul.mubr.msk.bf16.gmra.mxu0 %vm464_vm0, %v1163_v18  ;;  %1077 = vmatmul.mubr.msk.bf16.gmra.mxu1 %vm464_vm0, %v1164_v19 }
  0xe5   : > { %v1050_v21 = vpop.f32.mrf.mxu0  ;;  %v1066_v22 = vpop.f32.mrf.mxu1 }
  0xe6   : > { %v782_v23 = vadd.f32 %v1050_v21, %v1377_v20  ;;  %v798_v24 = vadd.f32 %v1066_v22, %v1377_v20 }
  0xe7   : > { %v547_v25 = vpop.f32.mrf.mxu0  ;;  %v611_v26 = vpop.f32.mrf.mxu1 }
  0xe8   : > { %814 = vst [vmem:[%s1381_s26 + $0x10] sm:$0xff] %v782_v23  ;;  %830 = vst [vmem:[%s1381_s26 + $0x90] sm:$0xff] %v798_v24  ;;  %v780_v27 = vadd.f32 %v1377_v20, %v547_v25  ;;  %v796_v28 = vadd.f32 %v1377_v20, %v611_v26 }
  0xe9   : > { %v1051_v29 = vpop.f32.mrf.mxu0  ;;  %v1067_v30 = vpop.f32.mrf.mxu1 }
  0xea   : > { %812 = vst [vmem:[%s1381_s26] sm:$0xff] %v780_v27  ;;  %828 = vst [vmem:[%s1381_s26 + $0x80] sm:$0xff] %v796_v28  ;;  %v783_v31 = vadd.f32 %v1051_v29, %v1377_v20  ;;  %v799_v32 = vadd.f32 %v1067_v30, %v1377_v20 }
  0xeb   : > { %v550_v33 = vpop.f32.mrf.mxu0  ;;  %v614_v34 = vpop.f32.mrf.mxu1 }
  0xec   : > { %815 = vst [vmem:[%s1381_s26 + $0x18] sm:$0xff] %v783_v31  ;;  %831 = vst [vmem:[%s1381_s26 + $0x98] sm:$0xff] %v799_v32  ;;  %v781_v35 = vadd.f32 %v1377_v20, %v550_v33  ;;  %v797_v36 = vadd.f32 %v1377_v20, %v614_v34 }
  0xed   : > { %v1054_v37 = vpop.f32.mrf.mxu0  ;;  %v1070_v38 = vpop.f32.mrf.mxu1 }
  0xee   : > { %813 = vst [vmem:[%s1381_s26 + $0x8] sm:$0xff] %v781_v35  ;;  %829 = vst [vmem:[%s1381_s26 + $0x88] sm:$0xff] %v797_v36  ;;  %v786_v39 = vadd.f32 %v1054_v37, %v1377_v20  ;;  %v802_v40 = vadd.f32 %v1070_v38, %v1377_v20 }
  0xef   : > { %v563_v41 = vpop.f32.mrf.mxu0  ;;  %v627_v42 = vpop.f32.mrf.mxu1 }
  0xf0   : > { %818 = vst [vmem:[%s1381_s26 + $0x30] sm:$0xff] %v786_v39  ;;  %834 = vst [vmem:[%s1381_s26 + $0xb0] sm:$0xff] %v802_v40  ;;  %v784_v43 = vadd.f32 %v1377_v20, %v563_v41  ;;  %v800_v44 = vadd.f32 %v1377_v20, %v627_v42 }
  0xf1   : > { %v1055_v45 = vpop.f32.mrf.mxu0  ;;  %v1071_v46 = vpop.f32.mrf.mxu1 }
  0xf2   : > { %816 = vst [vmem:[%s1381_s26 + $0x20] sm:$0xff] %v784_v43  ;;  %832 = vst [vmem:[%s1381_s26 + $0xa0] sm:$0xff] %v800_v44  ;;  %v787_v47 = vadd.f32 %v1055_v45, %v1377_v20  ;;  %v803_v48 = vadd.f32 %v1071_v46, %v1377_v20 }
  0xf3   : > { %v566_v49 = vpop.f32.mrf.mxu0  ;;  %v630_v50 = vpop.f32.mrf.mxu1 }
  0xf4   : > { %819 = vst [vmem:[%s1381_s26 + $0x38] sm:$0xff] %v787_v47  ;;  %835 = vst [vmem:[%s1381_s26 + $0xb8] sm:$0xff] %v803_v48  ;;  %v785_v51 = vadd.f32 %v1377_v20, %v566_v49  ;;  %v801_v52 = vadd.f32 %v1377_v20, %v630_v50 }
  0xf5   : > { %v1058_v53 = vpop.f32.mrf.mxu0  ;;  %v1074_v54 = vpop.f32.mrf.mxu1 }
  0xf6   : > { %817 = vst [vmem:[%s1381_s26 + $0x28] sm:$0xff] %v785_v51  ;;  %833 = vst [vmem:[%s1381_s26 + $0xa8] sm:$0xff] %v801_v52  ;;  %v790_v55 = vadd.f32 %v1058_v53, %v1377_v20  ;;  %v806_v56 = vadd.f32 %v1074_v54, %v1377_v20 }
  0xf7   : > { %v579_v57 = vpop.f32.mrf.mxu0  ;;  %v643_v58 = vpop.f32.mrf.mxu1 }
  0xf8   : > { %822 = vst [vmem:[%s1381_s26 + $0x50] sm:$0xff] %v790_v55  ;;  %838 = vst [vmem:[%s1381_s26 + $0xd0] sm:$0xff] %v806_v56  ;;  %v788_v59 = vadd.f32 %v1377_v20, %v579_v57  ;;  %v804_v60 = vadd.f32 %v1377_v20, %v643_v58 }
  0xf9   : > { %v1059_v61 = vpop.f32.mrf.mxu0  ;;  %v1075_v62 = vpop.f32.mrf.mxu1 }
  0xfa   : > { %820 = vst [vmem:[%s1381_s26 + $0x40] sm:$0xff] %v788_v59  ;;  %836 = vst [vmem:[%s1381_s26 + $0xc0] sm:$0xff] %v804_v60  ;;  %v791_v63 = vadd.f32 %v1059_v61, %v1377_v20  ;;  %v807_v0 = vadd.f32 %v1075_v62, %v1377_v20 }
  0xfb   : > { %v582_v1 = vpop.f32.mrf.mxu0  ;;  %v646_v2 = vpop.f32.mrf.mxu1 }
  0xfc   : > { %823 = vst [vmem:[%s1381_s26 + $0x58] sm:$0xff] %v791_v63  ;;  %839 = vst [vmem:[%s1381_s26 + $0xd8] sm:$0xff] %v807_v0  ;;  %v789_v3 = vadd.f32 %v1377_v20, %v582_v1  ;;  %v805_v4 = vadd.f32 %v1377_v20, %v646_v2 }
  0xfd   : > { %v1062_v5 = vpop.f32.mrf.mxu0  ;;  %v1078_v6 = vpop.f32.mrf.mxu1 }
  0xfe   : > { %821 = vst [vmem:[%s1381_s26 + $0x48] sm:$0xff] %v789_v3  ;;  %837 = vst [vmem:[%s1381_s26 + $0xc8] sm:$0xff] %v805_v4  ;;  %v794_v7 = vadd.f32 %v1062_v5, %v1377_v20  ;;  %v810_v8 = vadd.f32 %v1078_v6, %v1377_v20 }
  0xff   : > { %v595_v9 = vpop.f32.mrf.mxu0  ;;  %v659_v10 = vpop.f32.mrf.mxu1 }
 0x100   : > { %826 = vst [vmem:[%s1381_s26 + $0x70] sm:$0xff] %v794_v7  ;;  %842 = vst [vmem:[%s1381_s26 + $0xf0] sm:$0xff] %v810_v8  ;;  %v792_v11 = vadd.f32 %v1377_v20, %v595_v9  ;;  %v808_v12 = vadd.f32 %v1377_v20, %v659_v10 }
 0x101   : > { %v1063_v13 = vpop.f32.mrf.mxu0  ;;  %v1079_v14 = vpop.f32.mrf.mxu1 }
 0x102   : > { %824 = vst [vmem:[%s1381_s26 + $0x60] sm:$0xff] %v792_v11  ;;  %840 = vst [vmem:[%s1381_s26 + $0xe0] sm:$0xff] %v808_v12  ;;  %v795_v15 = vadd.f32 %v1063_v13, %v1377_v20  ;;  %v811_v16 = vadd.f32 %v1079_v14, %v1377_v20 }
 0x103   : > { %v598_v17 = vpop.f32.mrf.mxu0  ;;  %v662_v18 = vpop.f32.mrf.mxu1 }
 0x104   : > { %827 = vst [vmem:[%s1381_s26 + $0x78] sm:$0xff] %v795_v15  ;;  %843 = vst [vmem:[%s1381_s26 + $0xf8] sm:$0xff] %v811_v16  ;;  %v793_v19 = vadd.f32 %v1377_v20, %v598_v17  ;;  %v809_v21 = vadd.f32 %v1377_v20, %v662_v18 }
 0x106   : > { %825 = vst [vmem:[%s1381_s26 + $0x68] sm:$0xff] %v793_v19  ;;  %841 = vst [vmem:[%s1381_s26 + $0xe8] sm:$0xff] %v809_v21 }
 0x107   : > { %1178 = shalt.err (!%p1175_p5)
}
 0x108   : > { %s1179_s9 = scalar_lea.hbm %s1444_s4, 4096  ;;  %s1183_s18 = scalar_lea.hbm %s1504_s3, 8192 }
 0x109   : > { %p1180_p6 = scmp.ne.s32.totalorder %s1444_s4, %s1179_s9  ;;  %p1184_p10 = scmp.lt.s32.totalorder %s1444_s4, %s1504_s3 }
 0x10a   : > { %p1185_p11 = scmp.lt.s32.totalorder %s1183_s18, %s1179_s9 }
 0x10b   : > { %p1181_p7 = pnand %p1180_p6, %p1306_p4 }
 0x10c   : > { %p1186_p12 = por %p1185_p11, %p1184_p10 }
 0x10d   : > { %p1182_p9 = pneg %p1181_p7 }
 0x10f   : > { %p1187_p13 = pnand %p1186_p12, %p1182_p9 }
 0x111   : > { %1190 = shalt.err (!%p1187_p13)
}
 0x112   : > { %s1244_s23 = smov 128   ;;  %s1245_s26 = smov 8  }
 0x113   : > { %1088 = dma.vmem_to_hbm [thread:$0]  (%p1306_p4), %s1446_s28, 4096, %s1444_s4, %s1456_s15, %s1244_s23, %s1244_s23, %s1245_s26  }
 0x114 PF: > { %p1094_p0 = scmp.ge.s32.totalorder %s1241_s17, 2  ;;  %s874_s27 = sand.u32 1, %s1221_s12  }
 0x115   : > { %s875_s29 = scalar_lea.sflag [#allocation4], %s874_s27 }
 0x116   : > { %p1091_p1 = pnand %p1094_p0, %p1313_p8 }
 0x118   : > { %p1092_p2 = pneg %p1091_p1 }
 0x11a   : > { %1216 = dma.done.wait (%p1092_p2), %s875_s29, 4096  }
 0x11b   : > { %1218 = vsyncadd (%p1092_p2), %s875_s29, 4294963200  ;;  %s16_s17 = sadd.s32 1, %s1241_s17   ;;  %s1507_s12 = smov %s1225_s13 }
 0x11c   : > { %p13_p3 = scmp.ge.s32.totalorder %s16_s17, 4   ;;  %s1508_s13 = smov %s1229_s14 }
 0x11d   : > { %s1509_s14 = smov %s1319_s25  ;;  %s1510_s15 = smov %s1237_s16 }
 0x11e   : > { %s1511_s16 = smov %s1513_s20  ;;  %15 = sbr.rel (!%p13_p3) target bundleno = 4 (0x4), region = 81 }
 0x123   :  { %880 = vsyncpa [#allocation4], 1 }
 0x124   :  { %882 = vsyncpa [#allocation4 + $0x1], 1 }

</bundles_post_ra>
